<compile_context>
chip_gen: v6e
topology: v6e:2x2x1
jax: 0.10.0
libtpu: 0.0.40
codegen_flags: <defaults>
</compile_context>

<pallas_src>
import functools
import math

import jax
import jax.numpy as jnp
import numpy as np
from jax.experimental import pallas as pl
from jax.experimental.pallas import tpu as pltpu


def _round_up(x, m):
    return (x + m - 1) // m * m


# ---------------------------------------------------------------------------
# Main fused kernel: per row tile —
#   j == 0        : h = ReLU(x @ [W_seg; b_seg])  (bias folded via indicator lane)
#   every j       : logits_j = h @ W_dec[:, j-th tile] + b_dec_j
#                   online max / sum-exp update, label-logit gather,
#                   (tiled path) raw logits written for pass-2 normalization
#   j == last     : lse finalized; logp written (fused path) or lse written
#                   (tiled path); per-tile NLL partial written.
# ---------------------------------------------------------------------------
def _vqa_fwd_kernel(seg_ref, lbl_ref, x_ref, w_emb_ref, w_dec_ref, b_dec_ref,
                    *rest, v_real, tv, inv_denom, mask_vocab, return_logp,
                    fuse_logp):
    del seg_ref  # only consumed by the index_maps (segment-aware W_emb pick)
    if return_logp and fuse_logp:
        logp_ref, loss_ref, h_scr, m_scr, l_scr, p_scr = rest
    elif return_logp:
        z_ref, lse_ref, loss_ref, h_scr, m_scr, l_scr, p_scr = rest
    else:
        loss_ref, h_scr, m_scr, l_scr, p_scr = rest

    j = pl.program_id(1)
    nj = pl.num_programs(1)

    # Per-row-tile prologue: embedding matmul with the per-segment weight,
    # ReLU fusion (dropout identity at eval), online-softmax state init.
    @pl.when(j == 0)
    def _():
        emb = jnp.dot(x_ref[...], w_emb_ref[0],
                      preferred_element_type=jnp.float32)
        h_scr[...] = jnp.maximum(emb, 0.0).astype(jnp.bfloat16)
        m_scr[...] = jnp.full_like(m_scr, -jnp.inf)
        l_scr[...] = jnp.zeros_like(l_scr)
        p_scr[...] = jnp.zeros_like(p_scr)

    # Decoder head for this vocab tile (bf16 in, f32 accumulate).
    logits = (jnp.dot(h_scr[...], w_dec_ref[...],
                      preferred_element_type=jnp.float32) + b_dec_ref[...])

    col = jax.lax.broadcasted_iota(jnp.int32, logits.shape, 1) + j * tv
    if mask_vocab:  # only emitted when the vocab is not already 128-aligned
        logits = jnp.where(col < v_real, logits, jnp.float32(-1e30))

    if return_logp and not fuse_logp:
        z_ref[...] = logits.astype(z_ref.dtype)  # raw logits; normalized in pass 2

    # Online log-sum-exp across vocab tiles.
    m_new = jnp.maximum(m_scr[...], jnp.max(logits, axis=-1, keepdims=True))
    l_scr[...] = (l_scr[...] * jnp.exp(m_scr[...] - m_new)
                  + jnp.sum(jnp.exp(logits - m_new), axis=-1, keepdims=True))
    m_scr[...] = m_new

    # Fused NLLLoss gather: the (pre-shifted) label of each row falls in exactly
    # one vocab tile; -1 marks ignored rows (last position of each batch).
    lbl = lbl_ref[...]                                    # (tm, 1) int32
    p_scr[...] = p_scr[...] + jnp.sum(jnp.where(col == lbl, logits, 0.0),
                                      axis=-1, keepdims=True)

    @pl.when(j == nj - 1)
    def _():
        lse = m_scr[...] + jnp.log(l_scr[...])            # (tm, 1) f32
        if return_logp and fuse_logp:
            logp_ref[...] = (logits - lse).astype(logp_ref.dtype)
        elif return_logp:
            lse_ref[...] = jnp.broadcast_to(lse, lse_ref.shape)
        valid = (lbl >= 0).astype(jnp.float32)
        part = jnp.sum((lse - p_scr[...]) * valid) * inv_denom
        loss_ref[...] = jnp.full(loss_ref.shape, part, dtype=loss_ref.dtype)


# ---------------------------------------------------------------------------
# Pass 2 (only when the vocab is tiled): logp = raw_logits - lse.
# ---------------------------------------------------------------------------
def _logp_finalize_kernel(z_ref, lse_ref, logp_ref):
    lse = lse_ref[:, 0:1]
    logp_ref[...] = (z_ref[...].astype(jnp.float32) - lse).astype(logp_ref.dtype)


# ---------------------------------------------------------------------------
# Parameters + wrapper.
# ---------------------------------------------------------------------------
def init_params(key, d_text, d_vision, d_model, num_labels):
    ks = jax.random.split(key, 6)
    return {
        "w_text": jax.random.normal(ks[0], (d_text, d_model), jnp.float32) * 0.05,
        "b_text": jax.random.normal(ks[1], (1, d_model), jnp.float32) * 0.01,
        "w_vis": jax.random.normal(ks[2], (d_vision, d_model), jnp.float32) * 0.05,
        "b_vis": jax.random.normal(ks[3], (1, d_model), jnp.float32) * 0.01,
        "w_dec": jax.random.normal(ks[4], (d_model, num_labels), jnp.float32) * 0.05,
        "b_dec": jax.random.normal(ks[5], (1, num_labels), jnp.float32) * 0.01,
    }


@functools.partial(jax.jit,
                   static_argnames=("tm_max", "tv_max", "return_logp", "logp_dtype"))
def vqa_forward(params, text_feats, vision_feats, answer_ids, *,
                tm_max=512, tv_max=2048, return_logp=True,
                logp_dtype=jnp.bfloat16):
    B, Lt, d_text = text_feats.shape
    _, Lv, d_vision = vision_feats.shape
    d_model = params["w_text"].shape[1]
    V = params["w_dec"].shape[1]
    L = Lt + Lv
    rows = B * L
    f32, bf16 = jnp.float32, jnp.bfloat16

    # ---- static tiling choices ------------------------------------------
    # Row tile must divide both segment lengths so no tile straddles the
    # text/vision boundary (the index_map picks one weight per tile).
    tm = min(tm_max, Lt, Lv)
    tm = math.gcd(tm, math.gcd(Lt, Lv))
    assert Lt % tm == 0 and Lv % tm == 0
    assert tm % 8 == 0, "row tile must be a multiple of 8 sublanes"
    n_rt = rows // tm

    d_feat = max(d_text, d_vision) + 1        # +1 bias-indicator lane
    d_feat_p = _round_up(d_feat, 128)
    # Align the decoder contraction dim to the 256-wide v6e/v7x MXU when possible.
    d_model_p = _round_up(d_model, 256) if d_model >= 256 else _round_up(d_model, 128)
    v_p = _round_up(V, 128)
    mask_vocab = v_p != V

    tv = max(128, min(tv_max, v_p) // 128 * 128)
    while v_p % tv:
        tv -= 128
    n_vt = v_p // tv
    fuse_logp = n_vt == 1            # whole vocab in one tile -> single-pass logp

    # ---- host-side packing (small tensors only) ---------------------------
    x_text = jnp.concatenate([text_feats.astype(f32), jnp.ones((B, Lt, 1), f32)], -1)
    x_vis = jnp.concatenate([vision_feats.astype(f32), jnp.ones((B, Lv, 1), f32)], -1)
    x_text = jnp.pad(x_text, ((0, 0), (0, 0), (0, d_feat_p - (d_text + 1))))
    x_vis = jnp.pad(x_vis, ((0, 0), (0, 0), (0, d_feat_p - (d_vision + 1))))
    x = jnp.concatenate([x_text, x_vis], axis=1).reshape(rows, d_feat_p).astype(bf16)

    w_t = jnp.pad(jnp.concatenate([params["w_text"], params["b_text"]], axis=0),
                  ((0, d_feat_p - (d_text + 1)), (0, d_model_p - d_model)))
    w_v = jnp.pad(jnp.concatenate([params["w_vis"], params["b_vis"]], axis=0),
                  ((0, d_feat_p - (d_vision + 1)), (0, d_model_p - d_model)))
    w_emb = jnp.stack([w_t, w_v], axis=0).astype(bf16)       # (2, d_feat_p, d_model_p)
    w_dec = jnp.pad(params["w_dec"],
                    ((0, d_model_p - d_model), (0, v_p - V))).astype(bf16)
    b_dec = jnp.pad(params["b_dec"], ((0, 0), (0, v_p - V))).astype(f32)

    # Shifted labels aligned to logits rows; -1 = ignore (last position per batch).
    # Kept as a (tm,1) VMEM block (needed as a vector for the one-hot compare);
    # the scalar-prefetch machinery carries the per-tile segment ids instead.
    lbl = jnp.concatenate(
        [answer_ids[:, 1:].astype(jnp.int32), jnp.full((B, 1), -1, jnp.int32)],
        axis=1).reshape(rows, 1)

    # Per-row-tile segment id (0 = text, 1 = vision) -> SMEM scalar prefetch.
    seg_ids = jnp.asarray(((np.arange(n_rt) * tm) % L >= Lt).astype(np.int32))

    # ---- specs -------------------------------------------------------------
    # Single-buffer the decoder weight/bias when their tile index is constant.
    dec_pipe = dict(pipeline_mode=pl.Buffered(1)) if n_vt == 1 else {}
    in_specs = [
        pl.BlockSpec((tm, 1), lambda i, j, s: (i, 0)),                         # labels
        pl.BlockSpec((tm, d_feat_p), lambda i, j, s: (i, 0)),                  # features
        pl.BlockSpec((1, d_feat_p, d_model_p), lambda i, j, s: (s[i], 0, 0)),  # W_emb[seg]
        pl.BlockSpec((d_model_p, tv), lambda i, j, s: (0, j), **dec_pipe),     # W_dec tile
        pl.BlockSpec((1, tv), lambda i, j, s: (0, j), **dec_pipe),             # b_dec tile
    ]
    loss_spec = pl.BlockSpec((1, 8, 128), lambda i, j, s: (i, 0, 0))
    loss_shape = jax.ShapeDtypeStruct((n_rt, 8, 128), f32)

    if return_logp and fuse_logp:
        out_shape = (jax.ShapeDtypeStruct((rows, v_p), logp_dtype), loss_shape)
        out_specs = (pl.BlockSpec((tm, tv), lambda i, j, s: (i, j)), loss_spec)
    elif return_logp:
        out_shape = (jax.ShapeDtypeStruct((rows, v_p), bf16),        # raw logits
                     jax.ShapeDtypeStruct((rows, 128), f32),         # per-row lse
                     loss_shape)
        out_specs = (pl.BlockSpec((tm, tv), lambda i, j, s: (i, j)),
                     pl.BlockSpec((tm, 128), lambda i, j, s: (i, 0)),
                     loss_spec)
    else:
        out_shape = loss_shape
        out_specs = loss_spec

    scratch = [
        pltpu.VMEM((tm, d_model_p), bf16),   # h = ReLU(embed)
        pltpu.VMEM((tm, 1), f32),            # running max
        pltpu.VMEM((tm, 1), f32),            # running sum-exp
        pltpu.VMEM((tm, 1), f32),            # picked label logit
    ]

    # VMEM budget from actual buffer sizes (double buffers where applicable);
    # 32 MiB floor, 96 MiB cap (keep the v7x 64 MiB physical budget in mind
    # when choosing tm/tv for real configs).
    logp_bytes = jnp.dtype(logp_dtype).itemsize
    est = (2 * tm * d_feat_p * 2 + 2 * tm * 128 * 4
           + 2 * d_feat_p * d_model_p * 2
           + (1 if n_vt == 1 else 2) * (d_model_p * tv * 2 + 8 * tv * 4)
           + 2 * 8 * 128 * 4
           + tm * d_model_p * 2 + 3 * tm * 128 * 4)
    if return_logp:
        est += 2 * tm * tv * max(2, logp_bytes) + 2 * tm * 128 * 4
    vmem_limit = int(min(max(3 * est // 2 + (2 << 20), 32 << 20), 96 << 20))

    kernel = functools.partial(
        _vqa_fwd_kernel, v_real=V, tv=tv, inv_denom=1.0 / float(B * (L - 1)),
        mask_vocab=mask_vocab, return_logp=return_logp, fuse_logp=fuse_logp)

    outs = pl.pallas_call(
        kernel,
        out_shape=out_shape,
        grid_spec=pltpu.PrefetchScalarGridSpec(
            num_scalar_prefetch=1,
            grid=(n_rt, n_vt),
            in_specs=in_specs,
            out_specs=out_specs,
            scratch_shapes=scratch),
        compiler_params=pltpu.CompilerParams(
            dimension_semantics=("parallel", "arbitrary"),
            vmem_limit_bytes=vmem_limit),
    )(seg_ids, lbl, x, w_emb, w_dec, b_dec)

    if not return_logp:
        return jnp.sum(outs[:, 0, 0])

    if fuse_logp:
        logp_flat, loss_part = outs
    else:
        z, lse, loss_part = outs
        logp_flat = pl.pallas_call(
            _logp_finalize_kernel,
            out_shape=jax.ShapeDtypeStruct((rows, v_p), logp_dtype),
            grid=(n_rt, n_vt),
            in_specs=[pl.BlockSpec((tm, tv), lambda i, j: (i, j)),
                      pl.BlockSpec((tm, 128), lambda i, j: (i, 0))],
            out_specs=pl.BlockSpec((tm, tv), lambda i, j: (i, j)),
            compiler_params=pltpu.CompilerParams(
                dimension_semantics=("parallel", "parallel"),
                vmem_limit_bytes=vmem_limit),
        )(z, lse)

    loss = jnp.sum(loss_part[:, 0, 0])
    logp = logp_flat.reshape(B, L, v_p)
    if mask_vocab:
        logp = logp[..., :V]   # only when the vocab is not already lane-aligned
    return logp, loss


# ---------------------------------------------------------------------------
# Pure-JAX reference (same bf16-into-MXU numerics) for correctness checking.
# ---------------------------------------------------------------------------
def _reference_forward(params, text_feats, vision_feats, answer_ids):
    f32, bf16 = jnp.float32, jnp.bfloat16
    et = (jnp.dot(text_feats.astype(bf16), params["w_text"].astype(bf16),
                  preferred_element_type=f32)
          + params["b_text"].astype(bf16).astype(f32))
    ev = (jnp.dot(vision_feats.astype(bf16), params["w_vis"].astype(bf16),
                  preferred_element_type=f32)
          + params["b_vis"].astype(bf16).astype(f32))
    fused = jnp.maximum(jnp.concatenate([et, ev], axis=1), 0.0).astype(bf16)
    logits = (jnp.dot(fused, params["w_dec"].astype(bf16),
                      preferred_element_type=f32) + params["b_dec"])
    logp = jax.nn.log_softmax(logits, axis=-1)
    V = logp.shape[-1]
    sp = logp[:, :-1, :].reshape(-1, V)
    sl = answer_ids[:, 1:].reshape(-1)
    loss = -jnp.mean(jnp.take_along_axis(sp, sl[:, None], axis=1))
    return logp, loss


if __name__ == "__main__":
    # Small synthetic config (lane-aligned vocab; segments divisible by the row tile).
    B = 2
    L_text, L_vision = 16, 16        # fused sequence length = 32 (decoder seq_len)
    d_text, d_vision = 32, 48
    d_model = 128                    # intermediate_dims
    num_labels = 256                 # len(tokenizer), multiple of 128 -> no crop/mask
    L = L_text + L_vision

    key = jax.random.PRNGKey(0)
    kp, kt, kv, kl = jax.random.split(key, 4)

    params = init_params(kp, d_text, d_vision, d_model, num_labels)
    text_feats = jax.random.normal(kt, (B, L_text, d_text), jnp.float32)
    vision_feats = jax.random.normal(kv, (B, L_vision, d_vision), jnp.float32)
    answer_ids = jax.random.randint(kl, (B, L), 0, num_labels, jnp.int32)

    ref_logp, ref_loss = _reference_forward(params, text_feats, vision_feats, answer_ids)

    # 1) Vocab-tiled path (2 vocab tiles -> online log_softmax + finalize sweep).
    logp, loss = vqa_forward(params, text_feats, vision_feats, answer_ids,
                             tv_max=128, return_logp=True)
    jax.block_until_ready((logp, loss))
    assert logp.shape == (B, L, num_labels)
    row_sums = jnp.exp(logp.astype(jnp.float32)).sum(-1)
    assert jnp.allclose(row_sums, 1.0, atol=3e-2)
    assert bool(jnp.isfinite(loss))
    assert jnp.allclose(logp.astype(jnp.float32), ref_logp, atol=3e-2, rtol=3e-2)
    assert jnp.allclose(loss, ref_loss, atol=1e-2, rtol=1e-2)

    # 2) Single-vocab-tile path (resident, Buffered(1) decoder weight, fused logp).
    logp2, loss2 = vqa_forward(params, text_feats, vision_feats, answer_ids,
                               tv_max=256, return_logp=True)
    jax.block_until_ready((logp2, loss2))
    assert jnp.allclose(logp2.astype(jnp.float32), ref_logp, atol=3e-2, rtol=3e-2)
    assert jnp.allclose(loss2, ref_loss, atol=1e-2, rtol=1e-2)

    # 3) Loss-only mode: no logp writeback at all.
    loss3 = vqa_forward(params, text_feats, vision_feats, answer_ids,
                        tv_max=128, return_logp=False)
    jax.block_until_ready(loss3)
    assert jnp.allclose(loss3, ref_loss, atol=1e-2, rtol=1e-2)

    print("KERNEL_OK")
</pallas_src>

<mosaic_0001>
module attributes {stable_mosaic.version = 11 : i64} {
  func.func @_vqa_fwd_kernel(%arg0: i32, %arg1: i32, %arg2: memref<4xi32, #tpu.memory_space<smem>>, %arg3: memref<16x1xi32, #tpu.memory_space<vmem>>, %arg4: memref<16x128xbf16, #tpu.memory_space<vmem>>, %arg5: memref<1x128x128xbf16, #tpu.memory_space<vmem>>, %arg6: memref<128x128xbf16, #tpu.memory_space<vmem>>, %arg7: memref<1x128xf32, #tpu.memory_space<vmem>>, %arg8: memref<16x128xbf16, #tpu.memory_space<vmem>>, %arg9: memref<16x128xf32, #tpu.memory_space<vmem>>, %arg10: memref<1x8x128xf32, #tpu.memory_space<vmem>>, %arg11: memref<16x128xbf16, #tpu.memory_space<vmem>>, %arg12: memref<16x1xf32, #tpu.memory_space<vmem>>, %arg13: memref<16x1xf32, #tpu.memory_space<vmem>>, %arg14: memref<16x1xf32, #tpu.memory_space<vmem>>) attributes {dimension_semantics = [#tpu.dimension_semantics<parallel>, #tpu.dimension_semantics<arbitrary>], iteration_bounds = array<i64: 4, 2>, scalar_prefetch = 1 : i64, scratch_operands = 4 : i64, tpu.core_type = #tpu.core_type<tc>, window_params = [{transform_indices = @transform_0, window_bounds = array<i64: 16, 1>}, {transform_indices = @transform_1, window_bounds = array<i64: 16, 128>}, {transform_indices = @transform_2, window_bounds = array<i64: 1, 128, 128>}, {transform_indices = @transform_3, window_bounds = array<i64: 128, 128>}, {transform_indices = @transform_4, window_bounds = array<i64: 1, 128>}, {transform_indices = @transform_5, window_bounds = array<i64: 16, 128>}, {transform_indices = @transform_6, window_bounds = array<i64: 16, 128>}, {transform_indices = @transform_7, window_bounds = array<i64: 1, 8, 128>}]} {
    %c0_i32 = arith.constant 0 : i32
    %0 = arith.cmpi eq, %arg1, %c0_i32 : i32
    %1 = arith.extui %0 : i1 to i32
    %c0_i32_0 = arith.constant 0 : i32
    %2 = arith.cmpi ne, %1, %c0_i32_0 : i32
    scf.if %2 {
      %c0_29 = arith.constant 0 : index
      %c0_30 = arith.constant 0 : index
      %45 = vector.load %arg4[%c0_29, %c0_30] : memref<16x128xbf16, #tpu.memory_space<vmem>>, vector<16x128xbf16>
      %c0_31 = arith.constant 0 : index
      %c0_32 = arith.constant 0 : index
      %c0_33 = arith.constant 0 : index
      %46 = vector.load %arg5[%c0_31, %c0_32, %c0_33] : memref<1x128x128xbf16, #tpu.memory_space<vmem>>, vector<1x128x128xbf16>
      %47 = vector.shape_cast %46 : vector<1x128x128xbf16> to vector<128x128xbf16>
      %cst_34 = arith.constant dense<0.000000e+00> : vector<16x128xf32>
      %48 = tpu.matmul %45, %47, %cst_34 {dimension_numbers = #tpu.dot_dimension_numbers<[1], [0], [0], [1], [0, 0, 1, 1], [], []>} : vector<16x128xbf16>, vector<128x128xbf16>, vector<16x128xf32> -> vector<16x128xf32>
      %cst_35 = arith.constant 0.000000e+00 : f32
      %49 = vector.broadcast %cst_35 : f32 to vector<16x128xf32>
      %50 = arith.maximumf %48, %49 : vector<16x128xf32>
      %51 = arith.truncf %50 : vector<16x128xf32> to vector<16x128xbf16>
      %c0_36 = arith.constant 0 : index
      %c0_37 = arith.constant 0 : index
      %52 = vector.load %arg11[%c0_36, %c0_37] : memref<16x128xbf16, #tpu.memory_space<vmem>>, vector<16x128xbf16>
      tpu.vector_store %arg11[%c0_36, %c0_37], %51 {strides = array<i32>} : memref<16x128xbf16, #tpu.memory_space<vmem>>, vector<16x128xbf16>,
      %cst_38 = arith.constant 0xFF800000 : f32
      %53 = vector.broadcast %cst_38 : f32 to vector<16x1xf32>
      %c0_39 = arith.constant 0 : index
      %c0_40 = arith.constant 0 : index
      %54 = vector.load %arg12[%c0_39, %c0_40] : memref<16x1xf32, #tpu.memory_space<vmem>>, vector<16x1xf32>
      tpu.vector_store %arg12[%c0_39, %c0_40], %53 {strides = array<i32>} : memref<16x1xf32, #tpu.memory_space<vmem>>, vector<16x1xf32>,
      %cst_41 = arith.constant 0.000000e+00 : f32
      %55 = vector.broadcast %cst_41 : f32 to vector<16x1xf32>
      %c0_42 = arith.constant 0 : index
      %c0_43 = arith.constant 0 : index
      %56 = vector.load %arg13[%c0_42, %c0_43] : memref<16x1xf32, #tpu.memory_space<vmem>>, vector<16x1xf32>
      tpu.vector_store %arg13[%c0_42, %c0_43], %55 {strides = array<i32>} : memref<16x1xf32, #tpu.memory_space<vmem>>, vector<16x1xf32>,
      %cst_44 = arith.constant 0.000000e+00 : f32
      %57 = vector.broadcast %cst_44 : f32 to vector<16x1xf32>
      %c0_45 = arith.constant 0 : index
      %c0_46 = arith.constant 0 : index
      %58 = vector.load %arg14[%c0_45, %c0_46] : memref<16x1xf32, #tpu.memory_space<vmem>>, vector<16x1xf32>
      tpu.vector_store %arg14[%c0_45, %c0_46], %57 {strides = array<i32>} : memref<16x1xf32, #tpu.memory_space<vmem>>, vector<16x1xf32>,
    } else {
    }
    %c0 = arith.constant 0 : index
    %c0_1 = arith.constant 0 : index
    %3 = vector.load %arg11[%c0, %c0_1] : memref<16x128xbf16, #tpu.memory_space<vmem>>, vector<16x128xbf16>
    %c0_2 = arith.constant 0 : index
    %c0_3 = arith.constant 0 : index
    %4 = vector.load %arg6[%c0_2, %c0_3] : memref<128x128xbf16, #tpu.memory_space<vmem>>, vector<128x128xbf16>
    %cst = arith.constant dense<0.000000e+00> : vector<16x128xf32>
    %5 = tpu.matmul %3, %4, %cst {dimension_numbers = #tpu.dot_dimension_numbers<[1], [0], [0], [1], [0, 0, 1, 1], [], []>} : vector<16x128xbf16>, vector<128x128xbf16>, vector<16x128xf32> -> vector<16x128xf32>
    %c0_4 = arith.constant 0 : index
    %c0_5 = arith.constant 0 : index
    %6 = vector.load %arg7[%c0_4, %c0_5] : memref<1x128xf32, #tpu.memory_space<vmem>>, vector<1x128xf32>
    %7 = vector.broadcast %6 : vector<1x128xf32> to vector<16x128xf32>
    %8 = arith.addf %5, %7 : vector<16x128xf32>
    %9 = tpu.iota {dimensions = array<i32: 1>} : vector<16x128xi32>
    %c128_i32 = arith.constant 128 : i32
    %10 = arith.muli %arg1, %c128_i32 : i32
    %11 = vector.broadcast %10 : i32 to vector<16x128xi32>
    %12 = arith.addi %9, %11 : vector<16x128xi32>
    %13 = arith.truncf %8 : vector<16x128xf32> to vector<16x128xbf16>
    %c0_6 = arith.constant 0 : index
    %c0_7 = arith.constant 0 : index
    %14 = vector.load %arg8[%c0_6, %c0_7] : memref<16x128xbf16, #tpu.memory_space<vmem>>, vector<16x128xbf16>
    tpu.vector_store %arg8[%c0_6, %c0_7], %13 {strides = array<i32>} : memref<16x128xbf16, #tpu.memory_space<vmem>>, vector<16x128xbf16>,
    %c0_8 = arith.constant 0 : index
    %c0_9 = arith.constant 0 : index
    %15 = vector.load %arg12[%c0_8, %c0_9] : memref<16x1xf32, #tpu.memory_space<vmem>>, vector<16x1xf32>
    %cst_10 = arith.constant dense<0xFF800000> : vector<16xf32>
    %16 = vector.multi_reduction <maximumf>, %8, %cst_10 [1] : vector<16x128xf32> to vector<16xf32>
    %17 = vector.shape_cast %16 : vector<16xf32> to vector<16x1xf32>
    %18 = arith.maximumf %15, %17 : vector<16x1xf32>
    %c0_11 = arith.constant 0 : index
    %c0_12 = arith.constant 0 : index
    %19 = vector.load %arg13[%c0_11, %c0_12] : memref<16x1xf32, #tpu.memory_space<vmem>>, vector<16x1xf32>
    %c0_13 = arith.constant 0 : index
    %c0_14 = arith.constant 0 : index
    %20 = vector.load %arg12[%c0_13, %c0_14] : memref<16x1xf32, #tpu.memory_space<vmem>>, vector<16x1xf32>
    %21 = arith.subf %20, %18 : vector<16x1xf32>
    %22 = math.exp %21 : vector<16x1xf32>
    %23 = arith.mulf %19, %22 : vector<16x1xf32>
    %24 = vector.broadcast %18 : vector<16x1xf32> to vector<16x128xf32>
    %25 = arith.subf %8, %24 : vector<16x128xf32>
    %26 = math.exp %25 : vector<16x128xf32>
    %cst_15 = arith.constant dense<0.000000e+00> : vector<16xf32>
    %27 = vector.multi_reduction <add>, %26, %cst_15 [1] : vector<16x128xf32> to vector<16xf32>
    %28 = vector.shape_cast %27 : vector<16xf32> to vector<16x1xf32>
    %29 = arith.addf %23, %28 : vector<16x1xf32>
    %c0_16 = arith.constant 0 : index
    %c0_17 = arith.constant 0 : index
    %30 = vector.load %arg13[%c0_16, %c0_17] : memref<16x1xf32, #tpu.memory_space<vmem>>, vector<16x1xf32>
    tpu.vector_store %arg13[%c0_16, %c0_17], %29 {strides = array<i32>} : memref<16x1xf32, #tpu.memory_space<vmem>>, vector<16x1xf32>,
    %c0_18 = arith.constant 0 : index
    %c0_19 = arith.constant 0 : index
    %31 = vector.load %arg12[%c0_18, %c0_19] : memref<16x1xf32, #tpu.memory_space<vmem>>, vector<16x1xf32>
    tpu.vector_store %arg12[%c0_18, %c0_19], %18 {strides = array<i32>} : memref<16x1xf32, #tpu.memory_space<vmem>>, vector<16x1xf32>,
    %c0_20 = arith.constant 0 : index
    %c0_21 = arith.constant 0 : index
    %32 = vector.load %arg3[%c0_20, %c0_21] : memref<16x1xi32, #tpu.memory_space<vmem>>, vector<16x1xi32>
    %c0_22 = arith.constant 0 : index
    %c0_23 = arith.constant 0 : index
    %33 = vector.load %arg14[%c0_22, %c0_23] : memref<16x1xf32, #tpu.memory_space<vmem>>, vector<16x1xf32>
    %34 = vector.broadcast %32 : vector<16x1xi32> to vector<16x128xi32>
    %35 = arith.cmpi eq, %12, %34 : vector<16x128xi32>
    %cst_24 = arith.constant 0.000000e+00 : f32
    %36 = vector.broadcast %cst_24 : f32 to vector<16x128xf32>
    %37 = arith.select %35, %8, %36 : vector<16x128xi1>, vector<16x128xf32>
    %cst_25 = arith.constant dense<0.000000e+00> : vector<16xf32>
    %38 = vector.multi_reduction <add>, %37, %cst_25 [1] : vector<16x128xf32> to vector<16xf32>
    %39 = vector.shape_cast %38 : vector<16xf32> to vector<16x1xf32>
    %40 = arith.addf %33, %39 : vector<16x1xf32>
    %c0_26 = arith.constant 0 : index
    %c0_27 = arith.constant 0 : index
    %41 = vector.load %arg14[%c0_26, %c0_27] : memref<16x1xf32, #tpu.memory_space<vmem>>, vector<16x1xf32>
    tpu.vector_store %arg14[%c0_26, %c0_27], %40 {strides = array<i32>} : memref<16x1xf32, #tpu.memory_space<vmem>>, vector<16x1xf32>,
    %c1_i32 = arith.constant 1 : i32
    %42 = arith.cmpi eq, %arg1, %c1_i32 : i32
    %43 = arith.extui %42 : i1 to i32
    %c0_i32_28 = arith.constant 0 : i32
    %44 = arith.cmpi ne, %43, %c0_i32_28 : i32
    scf.if %44 {
      %c0_29 = arith.constant 0 : index
      %c0_30 = arith.constant 0 : index
      %45 = vector.load %arg12[%c0_29, %c0_30] : memref<16x1xf32, #tpu.memory_space<vmem>>, vector<16x1xf32>
      %c0_31 = arith.constant 0 : index
      %c0_32 = arith.constant 0 : index
      %46 = vector.load %arg13[%c0_31, %c0_32] : memref<16x1xf32, #tpu.memory_space<vmem>>, vector<16x1xf32>
      %47 = math.log %46 : vector<16x1xf32>
      %48 = arith.addf %45, %47 : vector<16x1xf32>
      %49 = vector.shape_cast %48 : vector<16x1xf32> to vector<16x1xf32>
      %50 = vector.broadcast %49 : vector<16x1xf32> to vector<16x128xf32>
      %c0_33 = arith.constant 0 : index
      %c0_34 = arith.constant 0 : index
      %51 = vector.load %arg9[%c0_33, %c0_34] : memref<16x128xf32, #tpu.memory_space<vmem>>, vector<16x128xf32>
      tpu.vector_store %arg9[%c0_33, %c0_34], %50 {strides = array<i32>} : memref<16x128xf32, #tpu.memory_space<vmem>>, vector<16x128xf32>,
      %c0_i32_35 = arith.constant 0 : i32
      %52 = vector.broadcast %c0_i32_35 : i32 to vector<16x1xi32>
      %53 = arith.cmpi sge, %32, %52 : vector<16x1xi32>
      %54 = arith.extui %53 : vector<16x1xi1> to vector<16x1xi32>
      %55 = arith.sitofp %54 : vector<16x1xi32> to vector<16x1xf32>
      %c0_36 = arith.constant 0 : index
      %c0_37 = arith.constant 0 : index
      %56 = vector.load %arg14[%c0_36, %c0_37] : memref<16x1xf32, #tpu.memory_space<vmem>>, vector<16x1xf32>
      %57 = arith.subf %48, %56 : vector<16x1xf32>
      %58 = arith.mulf %57, %55 : vector<16x1xf32>
      %59 = vector.shape_cast %58 : vector<16x1xf32> to vector<1x16x1xf32>
      %cst_38 = arith.constant dense<0.000000e+00> : vector<1xf32>
      %60 = vector.multi_reduction <add>, %59, %cst_38 [1, 2] : vector<1x16x1xf32> to vector<1xf32>
      %61 = vector.shape_cast %60 : vector<1xf32> to vector<1x1x1xf32>
      %62 = vector.extract %61[0, 0, 0] : f32 from vector<1x1x1xf32>
      %cst_39 = arith.constant 0.0161290318 : f32
      %63 = arith.mulf %62, %cst_39 : f32
      %64 = vector.broadcast %63 : f32 to vector<1x8x128xf32>
      %c0_40 = arith.constant 0 : index
      %c0_41 = arith.constant 0 : index
      %c0_42 = arith.constant 0 : index
      %65 = vector.load %arg10[%c0_40, %c0_41, %c0_42] : memref<1x8x128xf32, #tpu.memory_space<vmem>>, vector<1x8x128xf32>
      tpu.vector_store %arg10[%c0_40, %c0_41, %c0_42], %64 {strides = array<i32>} : memref<1x8x128xf32, #tpu.memory_space<vmem>>, vector<1x8x128xf32>,
    } else {
    }
    return
  }
  func.func @transform_0(%arg0: i32, %arg1: i32, %arg2: memref<4xi32, #tpu.memory_space<smem>>) -> (i32, i32) {
    %c0_i32 = arith.constant 0 : i32
    %c0_i32_0 = arith.constant 0 : i32
    return %arg0, %c0_i32 : i32, i32
  }
  func.func @transform_1(%arg0: i32, %arg1: i32, %arg2: memref<4xi32, #tpu.memory_space<smem>>) -> (i32, i32) {
    %c0_i32 = arith.constant 0 : i32
    %c0_i32_0 = arith.constant 0 : i32
    return %arg0, %c0_i32 : i32, i32
  }
  func.func @transform_2(%arg0: i32, %arg1: i32, %arg2: memref<4xi32, #tpu.memory_space<smem>>) -> (i32, i32, i32) {
    %0 = arith.index_cast %arg0 : i32 to index
    %1 = memref.load %arg2[%0] : memref<4xi32, #tpu.memory_space<smem>>
    %c0_i32 = arith.constant 0 : i32
    %c0_i32_0 = arith.constant 0 : i32
    %c0_i32_1 = arith.constant 0 : i32
    return %1, %c0_i32, %c0_i32_0 : i32, i32, i32
  }
  func.func @transform_3(%arg0: i32, %arg1: i32, %arg2: memref<4xi32, #tpu.memory_space<smem>>) -> (i32, i32) {
    %c0_i32 = arith.constant 0 : i32
    %c0_i32_0 = arith.constant 0 : i32
    return %c0_i32, %arg1 : i32, i32
  }
  func.func @transform_4(%arg0: i32, %arg1: i32, %arg2: memref<4xi32, #tpu.memory_space<smem>>) -> (i32, i32) {
    %c0_i32 = arith.constant 0 : i32
    %c0_i32_0 = arith.constant 0 : i32
    return %c0_i32, %arg1 : i32, i32
  }
  func.func @transform_5(%arg0: i32, %arg1: i32, %arg2: memref<4xi32, #tpu.memory_space<smem>>) -> (i32, i32) {
    %c0_i32 = arith.constant 0 : i32
    return %arg0, %arg1 : i32, i32
  }
  func.func @transform_6(%arg0: i32, %arg1: i32, %arg2: memref<4xi32, #tpu.memory_space<smem>>) -> (i32, i32) {
    %c0_i32 = arith.constant 0 : i32
    %c0_i32_0 = arith.constant 0 : i32
    return %arg0, %c0_i32 : i32, i32
  }
  func.func @transform_7(%arg0: i32, %arg1: i32, %arg2: memref<4xi32, #tpu.memory_space<smem>>) -> (i32, i32, i32) {
    %c0_i32 = arith.constant 0 : i32
    %c0_i32_0 = arith.constant 0 : i32
    %c0_i32_1 = arith.constant 0 : i32
    return %arg0, %c0_i32, %c0_i32_0 : i32, i32, i32
  }
}

module attributes {stable_mosaic.version = 11 : i64} {
  func.func @_logp_finalize_kernel(%arg0: i32, %arg1: i32, %arg2: memref<16x128xbf16, #tpu.memory_space<vmem>>, %arg3: memref<16x128xf32, #tpu.memory_space<vmem>>, %arg4: memref<16x128xbf16, #tpu.memory_space<vmem>>) attributes {dimension_semantics = [#tpu.dimension_semantics<parallel>, #tpu.dimension_semantics<parallel>], iteration_bounds = array<i64: 4, 2>, scalar_prefetch = 0 : i64, scratch_operands = 0 : i64, tpu.core_type = #tpu.core_type<tc>, window_params = [{transform_indices = @transform_0, window_bounds = array<i64: 16, 128>}, {transform_indices = @transform_1, window_bounds = array<i64: 16, 128>}, {transform_indices = @transform_2, window_bounds = array<i64: 16, 128>}]} {
    %c0 = arith.constant 0 : index
    %c0_0 = arith.constant 0 : index
    %0 = vector.load %arg3[%c0, %c0_0] : memref<16x128xf32, #tpu.memory_space<vmem>>, vector<16x1xf32>
    %c0_1 = arith.constant 0 : index
    %c0_2 = arith.constant 0 : index
    %1 = vector.load %arg2[%c0_1, %c0_2] : memref<16x128xbf16, #tpu.memory_space<vmem>>, vector<16x128xbf16>
    %2 = arith.extf %1 : vector<16x128xbf16> to vector<16x128xf32>
    %3 = vector.broadcast %0 : vector<16x1xf32> to vector<16x128xf32>
    %4 = arith.subf %2, %3 : vector<16x128xf32>
    %5 = arith.truncf %4 : vector<16x128xf32> to vector<16x128xbf16>
    %c0_3 = arith.constant 0 : index
    %c0_4 = arith.constant 0 : index
    %6 = vector.load %arg4[%c0_3, %c0_4] : memref<16x128xbf16, #tpu.memory_space<vmem>>, vector<16x128xbf16>
    tpu.vector_store %arg4[%c0_3, %c0_4], %5 {strides = array<i32>} : memref<16x128xbf16, #tpu.memory_space<vmem>>, vector<16x128xbf16>,
    return
  }
  func.func @transform_0(%arg0: i32, %arg1: i32) -> (i32, i32) {
    %c0_i32 = arith.constant 0 : i32
    return %arg0, %arg1 : i32, i32
  }
  func.func @transform_1(%arg0: i32, %arg1: i32) -> (i32, i32) {
    %c0_i32 = arith.constant 0 : i32
    %c0_i32_0 = arith.constant 0 : i32
    return %arg0, %c0_i32 : i32, i32
  }
  func.func @transform_2(%arg0: i32, %arg1: i32) -> (i32, i32) {
    %c0_i32 = arith.constant 0 : i32
    return %arg0, %arg1 : i32, i32
  }
}

</mosaic_0001>

<bundles_post_ra>
// kernel: vqa_forward.3
= control target key start
LH: loop header
LB: loop body
LE: loop exit
PB: predicated region body
PF: predicated region fallthrough
CT: control target
= control target key end

     0   :  { %7 = vsyncpa [#allocation4], 0  ;;  %s745_s0 = inlined_call_operand.vmem [shape: bf16[64,256], index: 0, kind: input, shape index: {}]   ;;  %s746_s1 = inlined_call_operand.vmem [shape: f32[64,128], index: 1, kind: input, shape index: {}]   ;;  %s747_s2 = inlined_call_operand.hbm [shape: bf16[64,256], index: 2, kind: output, shape index: {}]  }
   0x1   :  { %9 = vsyncpa [#allocation4 + $0x1], 0  ;;  %s595_s9 = smov 0   ;;  %s597_s10 = smov 0  }
   0x2   :  { %s599_s11 = smov 0   ;;  %s601_s12 = smov 0  }
   0x3   :  { %s603_s13 = smov 0   ;;  %s605_s14 = smov 0  }
   0x4   :  { %s607_s15 = smov 0   ;;  %s609_s16 = smov 0  }
   0x5 LB: > { %s371_s17 = sadd.s32 4294967295, %s573_s16   ;;  %s372_s18 = sadd.s32 4294967294, %s573_s16   ;;  %s573_s16 = sphi %s609_s16, %s15_s16   ;;  %s569_s15 = sphi %s607_s15, %s757_s15   ;;  %s565_s14 = sphi %s605_s14, %s756_s14   ;;  %s561_s13 = sphi %s603_s13, %s755_s13   ;;  %s557_s12 = sphi %s601_s12, %s754_s12   ;;  %s553_s11 = sphi %s599_s11, %s753_s11   ;;  %s549_s10 = sphi %s597_s10, %s752_s10   ;;  %s545_s9 = sphi %s595_s9, %s751_s9  }
   0x6   : > { %s24_s19 = sadd.s32 1, %s565_s14  ;;  %s27_s20 = sadd.s32 1, %s569_s15 }
   0x7   : > { %p25_p0 = scmp.ge.s32.totalorder %s24_s19, 2  ;;  %p43_p1 = scmp.ne.s32.totalorder %s553_s11, %s549_s10 }
   0x8   : > { %p44_p2 = scmp.eq.s32.totalorder %s573_s16, 0  ;;  %p101_p5 = scmp.eq.s32.totalorder %s371_s17, 7 }
   0x9   : > { %s759_s19 = smov (%p25_p0, %s24_s19), 0  ;;  %s761_s20 = smov (!%p25_p0, %s27_s20), %s569_s15 }
   0xa   : > { %s32_s21 = ssub.s32 %s565_s14, %s759_s19  ;;  %p647_p3 = por %p44_p2, %p43_p1 }
   0xb   : > { %p29_p4 = scmp.ge.s32.totalorder %s761_s20, 4  ;;  %p106_p6 = scmp.ne.s32.totalorder %s549_s10, %s545_s9 }
   0xc   : > { %p107_p7 = scmp.eq.s32.totalorder %s372_s18, 7  ;;  %p655_p8 = por %p101_p5, %p43_p1 }
   0xd   : > { %s763_s20 = smov (%p29_p4, %s761_s20), 0  ;;  %s36_s27 = sadd.s32 1, %s553_s11 }
   0xe   : > { %p659_p9 = por %p107_p7, %p106_p6  ;;  %s31_s25 = ssub.s32 %s569_s15, %s763_s20 }
   0xf   : > { %s33_s26 = sor.u32 %s32_s21, %s31_s25  ;;  %p374_p11 = scmp.ge.s32.totalorder %s573_s16, 8 }
  0x10   : > { %p34_p10 = scmp.eq.s32.totalorder %s33_s26, 0 }
  0x11   : > { %123 = sbr.rel (%p374_p11) target bundleno = 29 (0x1d), region = 16 }
  0x12   : > { %s667_s28 = scalar_select %p34_p10, %s553_s11, %s36_s27  }
  0x16   : > { %126 = sbr.rel (!%p647_p3) target bundleno = 29 (0x1d), region = 20  ;;  %s128_s29 = sand.u32 (%p647_p3), 1, %s553_s11  }
  0x17   : > { %s392_s30 = sshll.u32 (%p647_p3), %s569_s15, 2  ;;  %s375_s3 = sshll.u32 (%p647_p3), %s128_s29, 3 }
  0x18   : > { %s133_s4 = sadd.s32 (%p647_p3), %s565_s14, %s392_s30  ;;  %s130_s17 = scalar_lea.vmem (%p647_p3), [#allocation2], %s375_s3 }
  0x19   : > { %s378_s5 = sshll.u32 (%p647_p3), %s133_s4, 2 }
  0x1a   : > { %s135_s8 = scalar_lea.vmem (%p647_p3), %s745_s0, %s378_s5 }
  0x1b   : > { %v152_v0 = vld [vmem:[%s135_s8] sm:$0xf]  ;;  %v154_v1 = vld [vmem:[%s135_s8 + $0x8] sm:$0xf] }
  0x1c   : > { %153 = vst [vmem:[%s130_s17] sm:$0xf] %v152_v0  ;;  %155 = vst [vmem:[%s130_s17 + $0x4] sm:$0xf] %v154_v1 }
  0x1d PF: > { %p379_p12 = scmp.ge.s32.totalorder %s573_s16, 1  ;;  %p191_p13 = scmp.lt.s32.totalorder %s573_s16, 9 }
  0x1f   : > { %p192_p0 = pnand %p379_p12, %p191_p13 }
  0x20   : > { %s382_s18 = sshll.u32 (!%p192_p0), %s561_s13, 1  ;;  %s198_s27 = sand.u32 (!%p192_p0), 1, %s549_s10  }
  0x21   : > { %195 = sbr.rel (%p192_p0) target bundleno = 189 (0xbd), region = 65  ;;  %p226_p1 = scmp.lt.s32.totalorder (!%p192_p0), %s382_s18, 7 }
  0x22   : > { %s380_s29 = sshll.u32 (!%p192_p0), %s198_s27, 3  ;;  %s395_s30 = sshll.u32 (!%p192_p0), %s561_s13, 2 }
  0x23   : > { %s200_s3 = scalar_lea.vmem (!%p192_p0), [#allocation2], %s380_s29  ;;  %s273_s4 = sadd.s32 (!%p192_p0), %s557_s12, %s395_s30 }
  0x24   : > { %s223_s5 = scalar_lea.vmem (!%p192_p0), [#allocation3], %s380_s29  ;;  %s389_s7 = sshll.u32 (!%p192_p0), %s273_s4, 6 }
  0x25   : > { %s276_s6 = sshll.u32 (!%p192_p0), %s223_s5, 4  ;;  %s692_s13 = scalar_lea.hbm (!%p192_p0), %s747_s2, %s389_s7  ;;  %s687_s6 = int_to_ptr.vmem [resolvable:$true] %s276_s6 }
  0x26   : > { %v575_v2 = vmov 0   ;;  %s765_s18 = smov (!%p226_p1, %s382_s18), 7  ;;  %v397_v5 = vld [vmem:[%s200_s3] sm:$0xff]   ;;  %s694_s12 = scalar_lea.sflag [#allocation4], %s198_s27 }
  0x27   : > { %480 = vset.pattern.permute.xlu0 %v575_v2  ;;  %s383_s21 = sshll.u32 %s765_s18, 3  ;;  %v398_v7 = vunpack.c.l.bf16 %v397_v5  ;;  %v399_v8 = vunpack.c.h.bf16 %v397_v5  ;;  %s481_s18 = scalar_lea.vmem %s687_s6, 128 }
  0x28   : > { %s229_s26 = scalar_lea.vmem %s746_s1, %s383_s21  ;;  %p482_p2 = scmp.ne.s32.totalorder %s687_s6, %s481_s18 }
  0x29   : > { %v232_v3 = vld [vmem:[%s229_s26] sm:$0xff]  ;;  %v233_v4 = vld [vmem:[%s229_s26 + $0x8] sm:$0xff]  ;;  %s576_s21 = smov [#allocation3]  }
  0x2a   : > { %240 = vperm.xlu0 %480, %v232_v3   ;;  %p483_p3 = pnand %p482_p2, %p655_p8  ;;  %s485_s22 = sshll.u32 %s576_s21, 4  ;;  %s486_s22 = int_to_ptr.vmem [resolvable:$false] %s485_s22 }
  0x2b   : > { %s487_s25 = scalar_lea.vmem %s486_s22, 256  ;;  %p488_p5 = scmp.lt.s32.totalorder %s687_s6, %s486_s22 }
  0x2c   : > { %p484_p4 = pneg %p483_p3  ;;  %p489_p6 = scmp.lt.s32.totalorder %s487_s25, %s481_s18 }
  0x2e   : > { %245 = vperm.xlu0 %480, %v233_v4   ;;  %p490_p7 = por %p489_p6, %p488_p5 }
  0x30   : > { %p491_p10 = pnand %p490_p7, %p484_p4 }
  0xa5   : > { %v241_v6 = vpop.permute.xlu0 %240 }
  0xa6   : > { %v248_v10 = vsub.f32 %v398_v7, %v241_v6 }
  0xa9   : > { %v246_v9 = vpop.permute.xlu0 %245 }
  0xaa   : > { %v249_v11 = vsub.f32 %v399_v8, %v246_v9 }
  0xac   : > { %v403_v12 = vpack.c.bf16 %v249_v11, %v248_v10 }
  0xae   : > { %404 = vst [vmem:[%s223_s5] sm:$0xff] %v403_v12  }
  0xaf   : > { %494 = shalt.err (!%p491_p10)
}
  0xb0   : > { %s495_s26 = scalar_lea.hbm %s692_s13, 128  ;;  %s499_s30 = scalar_lea.hbm %s747_s2, 1024 }
  0xb1   : > { %p496_p11 = scmp.ne.s32.totalorder %s692_s13, %s495_s26  ;;  %p500_p0 = scmp.lt.s32.totalorder %s692_s13, %s747_s2 }
  0xb2   : > { %p501_p1 = scmp.lt.s32.totalorder %s499_s30, %s495_s26 }
  0xb3   : > { %p497_p12 = pnand %p496_p11, %p655_p8 }
  0xb4   : > { %p502_p2 = por %p501_p1, %p500_p0 }
  0xb5   : > { %p498_p13 = pneg %p497_p12 }
  0xb7   : > { %p503_p3 = pnand %p502_p2, %p498_p13 }
  0xb9   : > { %506 = shalt.err (!%p503_p3)
}
  0xba   : > { %s577_s5 = smov 64   ;;  %s578_s7 = smov 128  }
  0xbb   : > { %s579_s8 = smov 4  }
  0xbc   : > { %405 = dma.vmem_to_hbm [thread:$0]  (%p655_p8), %s687_s6, 128, %s692_s13, %s694_s12, %s577_s5, %s578_s7, %s579_s8  }
  0xbd PF: > { %p411_p4 = scmp.ge.s32.totalorder %s573_s16, 2  ;;  %s291_s17 = sand.u32 1, %s545_s9  }
  0xbe   : > { %s292_s18 = scalar_lea.sflag [#allocation4], %s291_s17 }
  0xbf   : > { %p408_p5 = pnand %p411_p4, %p659_p9 }
  0xc1   : > { %p409_p6 = pneg %p408_p5 }
  0xc3   : > { %540 = dma.done.wait (%p409_p6), %s292_s18, 128  }
  0xc4   : > { %542 = vsyncadd (%p409_p6), %s292_s18, 4294967168  ;;  %s15_s16 = sadd.s32 1, %s573_s16   ;;  %s751_s9 = smov %s549_s10 }
  0xc5   : > { %p12_p7 = scmp.ge.s32.totalorder %s15_s16, 10   ;;  %s752_s10 = smov %s553_s11 }
  0xc6   : > { %s753_s11 = smov %s667_s28  ;;  %s754_s12 = smov %s565_s14 }
  0xc7   : > { %s755_s13 = smov %s569_s15  ;;  %s756_s14 = smov %s759_s19 }
  0xc8   : > { %s757_s15 = smov %s763_s20  ;;  %14 = sbr.rel (!%p12_p7) target bundleno = 5 (0x5), region = 112 }
  0xcd   :  { %297 = vsyncpa [#allocation4], 1 }
  0xce   :  { %299 = vsyncpa [#allocation4 + $0x1], 1 }

// kernel: vqa_forward.2
= control target key start
LH: loop header
LB: loop body
LE: loop exit
PB: predicated region body
PF: predicated region fallthrough
CT: control target
= control target key end

     0   :  { %s1748_s0 = inlined_call_operand.vmem [shape: s32[4], index: 0, kind: input, shape index: {}]   ;;  %s1749_s1 = inlined_call_operand.vmem [shape: s32[64,1], index: 1, kind: input, shape index: {}]   ;;  %s1750_s2 = inlined_call_operand.vmem [shape: bf16[64,128], index: 2, kind: input, shape index: {}]   ;;  %s1751_s3 = inlined_call_operand.vmem [shape: bf16[2,128,128], index: 3, kind: input, shape index: {}]   ;;  %s1752_s4 = inlined_call_operand.vmem [shape: bf16[128,256], index: 4, kind: input, shape index: {}]   ;;  %s1753_s5 = inlined_call_operand.vmem [shape: f32[1,256], index: 5, kind: input, shape index: {}]   ;;  %s1754_s6 = inlined_call_operand.vmem [shape: bf16[64,256], index: 6, kind: output, shape index: {0}]   ;;  %s1755_s7 = inlined_call_operand.vmem [shape: f32[64,128], index: 7, kind: output, shape index: {1}]   ;;  %s1756_s8 = inlined_call_operand.vmem [shape: f32[4,8,128], index: 8, kind: output, shape index: {2}]  }
   0x1   :  { %1763 = sst [smem:[#allocation19_spill]] %s1749_s1  ;;  %s14_s29 = sshll.u32 %s1748_s0, 4  ;;  %s15_s29 = int_to_ptr.vmem [resolvable:$true] %s14_s29 }
   0x2   :  { %1764 = sst [smem:[#allocation20_spill]] %s1750_s2  ;;  %s1379_s30 = scalar_lea.vmem %s15_s29, 16 }
   0x3   :  { %1765 = sst [smem:[#allocation21_spill]] %s1752_s4  ;;  %p1380_p0 = scmp.ne.s32.totalorder %s15_s29, %s1379_s30 }
   0x4   :  { %p1384_p1 = scmp.lt.s32.totalorder %s15_s29, %s15_s29  ;;  %p1385_p2 = scmp.lt.s32.totalorder %s1379_s30, %s1379_s30 }
   0x6   :  { %p1386_p3 = por %p1385_p2, %p1384_p1 }
   0x8   :  { %p1387_p4 = pnand %p1386_p3, %p1380_p0 }
   0xa   :  { %1390 = shalt.err (!%p1387_p4)  }
   0xb   :  { %s1465_s9 = smov [#allocation7]  }
   0xc   :  { %17 = dma.vmem_to_smem %s15_s29, 16, %s1465_s9, [#allocation6] }
   0xd   :  { %1427 = dma.done.wait [#allocation6], 16 }
   0xe   :  { %1428 = vsyncadd [#allocation6], 4294967280 }
   0xf   :  { %19 = sfence }
  0x10   :  { %s1522_s10 = smov 0   ;;  %s1524_s11 = smov 0  }
  0x11   :  { %s1526_s12 = smov 0   ;;  %s1528_s0 = smov 0  }
  0x12   :  { %s1530_s13 = smov 0   ;;  %s1532_s14 = smov 0  }
  0x13   :  { %s1534_s15 = smov 0   ;;  %s1536_s16 = smov 0  }
  0x14   :  { %s1538_s17 = smov 0  }
  0x15 LB: > { %1766 = sst [smem:[#allocation11_spill]] %s1435_s11  ;;  %s1136_s18 = sadd.s32 4294967295, %s1463_s17   ;;  %s1463_s17 = sphi %s1538_s17, %s25_s17   ;;  %s1459_s16 = sphi %s1536_s16, %s1785_s16   ;;  %s1455_s15 = sphi %s1534_s15, %s1784_s15   ;;  %s1451_s14 = sphi %s1532_s14, %s1783_s14   ;;  %s1447_s13 = sphi %s1530_s13, %s1782_s13   ;;  %s1443_s0 = sphi %s1528_s0, %s1781_s0   ;;  %s1439_s12 = sphi %s1526_s12, %s1780_s12   ;;  %s1435_s11 = sphi %s1524_s11, %s1779_s11   ;;  %s1431_s10 = sphi %s1522_s10, %s1778_s10  }
  0x16   : > { %1767 = sst [smem:[#allocation12_spill]] %s1443_s0  ;;  %s34_s19 = sadd.s32 1, %s1455_s15 }
  0x17   : > { %1768 = sst [smem:[#allocation13_spill]] %s1455_s15  ;;  %p35_p5 = scmp.ge.s32.totalorder %s34_s19, 2 }
  0x18   : > { %1769 = sst [smem:[#allocation14_spill]] %s1459_s16  ;;  %s37_s20 = sadd.s32 1, %s1459_s16 }
  0x19   : > { %s124_s21 = sadd.s32 1, %s1443_s0  ;;  %p131_p6 = scmp.ne.s32.totalorder %s1443_s0, %s1439_s12 }
  0x1a   : > { %s1787_s19 = smov (%p35_p5, %s34_s19), 0  ;;  %s1789_s20 = smov (!%p35_p5, %s37_s20), %s1459_s16 }
  0x1b   : > { %1770 = sst [smem:[#allocation15_spill]] %s1787_s19  ;;  %s121_s22 = ssub.s32 %s1455_s15, %s1787_s19 }
  0x1c   : > { %p132_p7 = scmp.eq.s32.totalorder %s1463_s17, 0  ;;  %p39_p8 = scmp.ge.s32.totalorder %s1789_s20, 4 }
  0x1d   : > { %p122_p9 = scmp.eq.s32.totalorder %s121_s22, 0  ;;  %s178_s23 = sadd.s32 1, %s1435_s11 }
  0x1e   : > { %p133_p10 = por %p132_p7, %p131_p6  ;;  %s1791_s20 = smov (%p39_p8, %s1789_s20), 0 }
  0x1f   : > { %1771 = sst [smem:[#allocation16_spill]] %s1791_s20  ;;  %s173_s25 = ssub.s32 %s1459_s16, %s1791_s20 }
  0x20   : > { %s1583_s24 = scalar_select %p122_p9, %s1443_s0, %s124_s21  }
  0x21   : > { %p188_p11 = scmp.ne.s32.totalorder %s1435_s11, %s1431_s10  ;;  %s175_s26 = sor.u32 %s173_s25, %s121_s22 }
  0x22   : > { %1772 = sst [smem:[#allocation17_spill]] %s1583_s24  ;;  %p189_p12 = scmp.eq.s32.totalorder %s1136_s18, 7 }
  0x23   : > { %p176_p13 = scmp.eq.s32.totalorder %s175_s26, 0  ;;  %p1139_p1 = scmp.ge.s32.totalorder %s1463_s17, 8 }
  0x24   : > { %p1589_p0 = por %p189_p12, %p188_p11 }
  0x25   : > { %s1594_s28 = scalar_select %p176_p13, %s1435_s11, %s178_s23  }
  0x26   : > { %263 = sbr.rel (%p1139_p1) target bundleno = 63 (0x3f), region = 16 }
  0x27   : > { %1774 = sst [smem:[#allocation18_spill]] %s1594_s28 }
  0x2b   : > { %294 = sbr.rel (!%p133_p10) target bundleno = 63 (0x3f), region = 32  ;;  %s296_s29 = sand.u32 (%p133_p10), 1, %s1443_s0  }
  0x2c   : > { %s1141_s30 = sshll.u32 (%p133_p10), %s1455_s15, 2  ;;  %s1140_s9 = sshll.u32 (%p133_p10), %s296_s29, 6 }
  0x2d   : > { %s1775_s4 = sld [smem:[#allocation21_spill]] (%p133_p10)  ;;  %s298_s22 = scalar_lea.vmem (%p133_p10), [#allocation8], %s1140_s9 }
  0x33   : > { %s1602_s18 = scalar_lea.vmem %s1775_s4, %s1141_s30 }
  0x34   : > { %v317_v0 = vld [vmem:[%s1602_s18] sm:$0xf]  ;;  %v319_v1 = vld [vmem:[%s1602_s18 + $0x8] sm:$0xf]  ;;  %v321_v2 = vld [vmem:[%s1602_s18 + $0x10] sm:$0xf] }
  0x35   : > { %318 = vst [vmem:[%s298_s22] sm:$0xf] %v317_v0  ;;  %320 = vst [vmem:[%s298_s22 + $0x4] sm:$0xf] %v319_v1  ;;  %v323_v3 = vld [vmem:[%s1602_s18 + $0x18] sm:$0xf] }
  0x36   : > { %v325_v4 = vld [vmem:[%s1602_s18 + $0x20] sm:$0xf]  ;;  %322 = vst [vmem:[%s298_s22 + $0x8] sm:$0xf] %v321_v2  ;;  %324 = vst [vmem:[%s298_s22 + $0xc] sm:$0xf] %v323_v3 }
  0x37   : > { %326 = vst [vmem:[%s298_s22 + $0x10] sm:$0xf] %v325_v4  ;;  %v327_v5 = vld [vmem:[%s1602_s18 + $0x28] sm:$0xf]  ;;  %v329_v6 = vld [vmem:[%s1602_s18 + $0x30] sm:$0xf] }
  0x38   : > { %v331_v7 = vld [vmem:[%s1602_s18 + $0x38] sm:$0xf]  ;;  %328 = vst [vmem:[%s298_s22 + $0x14] sm:$0xf] %v327_v5  ;;  %330 = vst [vmem:[%s298_s22 + $0x18] sm:$0xf] %v329_v6 }
  0x39   : > { %332 = vst [vmem:[%s298_s22 + $0x1c] sm:$0xf] %v331_v7  ;;  %v333_v8 = vld [vmem:[%s1602_s18 + $0x40] sm:$0xf]  ;;  %v335_v9 = vld [vmem:[%s1602_s18 + $0x48] sm:$0xf] }
  0x3a   : > { %v337_v10 = vld [vmem:[%s1602_s18 + $0x50] sm:$0xf]  ;;  %334 = vst [vmem:[%s298_s22 + $0x20] sm:$0xf] %v333_v8  ;;  %336 = vst [vmem:[%s298_s22 + $0x24] sm:$0xf] %v335_v9 }
  0x3b   : > { %338 = vst [vmem:[%s298_s22 + $0x28] sm:$0xf] %v337_v10  ;;  %v339_v11 = vld [vmem:[%s1602_s18 + $0x58] sm:$0xf]  ;;  %v341_v12 = vld [vmem:[%s1602_s18 + $0x60] sm:$0xf] }
  0x3c   : > { %v343_v13 = vld [vmem:[%s1602_s18 + $0x68] sm:$0xf]  ;;  %340 = vst [vmem:[%s298_s22 + $0x2c] sm:$0xf] %v339_v11  ;;  %342 = vst [vmem:[%s298_s22 + $0x30] sm:$0xf] %v341_v12 }
  0x3d   : > { %344 = vst [vmem:[%s298_s22 + $0x34] sm:$0xf] %v343_v13  ;;  %v345_v14 = vld [vmem:[%s1602_s18 + $0x70] sm:$0xf]  ;;  %v347_v15 = vld [vmem:[%s1602_s18 + $0x78] sm:$0xf] }
  0x3e   : > { %346 = vst [vmem:[%s298_s22 + $0x38] sm:$0xf] %v345_v14  ;;  %348 = vst [vmem:[%s298_s22 + $0x3c] sm:$0xf] %v347_v15 }
  0x3f PF: > { %p1142_p2 = scmp.ge.s32.totalorder %s1463_s17, 1  ;;  %p409_p3 = scmp.lt.s32.totalorder %s1463_s17, 9 }
  0x41   : > { %p410_p4 = pnand %p1142_p2, %p409_p3 }
  0x42   : > { %s416_s20 = sand.u32 (!%p410_p4), 1, %s1439_s12   ;;  %s458_s23 = sand.u32 (!%p410_p4), 1, %s1431_s10  }
  0x43   : > { %413 = sbr.rel (%p410_p4) target bundleno = 1218 (0x4c2), region = 77  ;;  %s1143_s25 = sshll.u32 (!%p410_p4), %s416_s20, 6 }
  0x44   : > { %s1144_s26 = sshll.u32 (!%p410_p4), %s458_s23, 3  ;;  %s1145_s29 = sshll.u32 (!%p410_p4), %s1451_s14, 1 }
  0x45   : > { %s486_s30 = sld [smem:[#allocation7 + %s1451_s14]] (!%p410_p4)  ;;  %p475_p5 = scmp.lt.s32.totalorder (!%p410_p4), %s1145_s29, 7 }
  0x46   : > { %p493_p6 = scmp.lt.s32.totalorder (!%p410_p4), %s1447_s13, 1  ;;  %p503_p7 = scmp.lt.s32.totalorder (!%p410_p4), %s1451_s14, 3 }
  0x47   : > { %s1776_s1 = sld [smem:[#allocation19_spill]] (!%p410_p4)  ;;  %s1661_s16 = scalar_lea.vmem (!%p410_p4), [#allocation8], %s1143_s25 }
  0x48   : > { %s1793_s29 = smov (!%p475_p5, %s1145_s29), 7  ;;  %s1777_s2 = sld [smem:[#allocation20_spill]] }
  0x49   : > { %s1629_s9 = scalar_select %p493_p6, %s1447_s13, 1 }
  0x4a   : > { %s1146_s21 = sshll.u32 %s1793_s29, 3  ;;  %s1148_s18 = sshll.u32 %s1793_s29, 2 }
  0x4b   : > { %p487_p8 = scmp.lt.s32.totalorder %s486_s30, 1  ;;  %s495_s15 = scalar_lea.vmem %s1753_s5, %s1629_s9 }
  0x4c   : > { %s1648_s28 = scalar_lea.vmem %s1755_s7, %s1146_s21  ;;  %s1663_s23 = scalar_lea.vmem [#allocation9], %s1144_s26 }
  0x4d   : > { %s1634_s19 = scalar_lea.vmem %s1776_s1, %s1146_s21  ;;  %s1795_s30 = smov (!%p487_p8, %s486_s30), 1 }
  0x4e   : > { %s1639_s20 = scalar_lea.vmem %s1777_s2, %s1148_s18  ;;  %s1188_s4 = sshll.u32 %s1795_s30, 6 }
  0x4f   : > { %s504_s29 = scalar_select %p503_p7, %s1451_s14, 3 }
  0x50   : > { %s1654_s11 = scalar_lea.vmem %s1751_s3, %s1188_s4  ;;  %p1154_p9 = scmp.ne.s32.totalorder %s1447_s13, 0 }
  0x51   : > { %s1153_s18 = sshll.u32 %s504_s29, 3 }
  0x52   : > { %s1659_s2 = scalar_lea.vmem %s1756_s8, %s1153_s18  ;;  %511 = sbr.rel (%p1154_p9) target bundleno = 322 (0x142), region = 85 }
  0x57   : > { %vm637_vm0 = vcmask 7168   ;;  %v1345_v16 = vld [vmem:[%s1654_s11 + $0x38] sm:$0xff]   ;;  %v1466_v17 = vmov 0.0   ;;  %v1467_v18 = vmov -inf   ;;  %v1346_v19 = vld [vmem:[%s1654_s11 + $0x30] sm:$0xff]   ;;  %vm1468_vm1 = vmmov 0  }
  0x58   : > { %1222 = vmatprep.subr.bf16.mxu0 %v1466_v17  ;;  %638 = vst.msk [vmem:[#allocation3] sm:$0xff] %vm637_vm0, %v1467_v18  ;;  %639 = vst.msk [vmem:[#allocation3 + $0x8] sm:$0xff] %vm637_vm0, %v1467_v18  ;;  %1238 = vmatprep.mubr.msk.bf16.mxu0 %vm1468_vm1, %v1466_v17  ;;  %v1347_v20 = vld [vmem:[%s1654_s11 + $0x28] sm:$0xff]   ;;  %v1348_v21 = vld [vmem:[%s1654_s11 + $0x20] sm:$0xff]  }
  0x59   : > { %640 = vst.msk [vmem:[#allocation4] sm:$0xff] %vm637_vm0, %v1466_v17  ;;  %641 = vst.msk [vmem:[#allocation4 + $0x8] sm:$0xff] %vm637_vm0, %v1466_v17  ;;  %1223 = vmatpush3.bf16.msra.mxu0 %v1345_v16  ;;  %v1349_v22 = vld [vmem:[%s1654_s11 + $0x18] sm:$0xff]   ;;  %v1350_v23 = vld [vmem:[%s1654_s11 + $0x10] sm:$0xff]  }
  0x5a   : > { %642 = vst.msk [vmem:[#allocation5] sm:$0xff] %vm637_vm0, %v1466_v17  ;;  %643 = vst.msk [vmem:[#allocation5 + $0x8] sm:$0xff] %vm637_vm0, %v1466_v17  ;;  %1224 = vmatprep.subr.bf16.mxu0 %v1466_v17  ;;  %v1351_v24 = vld [vmem:[%s1654_s11 + $0x8] sm:$0xff]   ;;  %v1352_v25 = vld [vmem:[%s1654_s11] sm:$0xff]  }
  0x5b   : > { %v1353_v26 = vld [vmem:[%s1639_s20] sm:$0xff]  }
  0x5d   : > { %1225 = vmatpush3.bf16.msra.mxu0 %v1346_v19 }
  0x5e   : > { %1226 = vmatprep.subr.bf16.mxu0 %v1466_v17 }
  0x61   : > { %1227 = vmatpush3.bf16.msra.mxu0 %v1347_v20 }
  0x62   : > { %1228 = vmatprep.subr.bf16.mxu0 %v1466_v17 }
  0x65   : > { %1229 = vmatpush3.bf16.msra.mxu0 %v1348_v21 }
  0x66   : > { %1230 = vmatprep.subr.bf16.mxu0 %v1466_v17 }
  0x69   : > { %1231 = vmatpush3.bf16.msra.mxu0 %v1349_v22 }
  0x6a   : > { %1232 = vmatprep.subr.bf16.mxu0 %v1466_v17 }
  0x6d   : > { %1233 = vmatpush3.bf16.msra.mxu0 %v1350_v23 }
  0x6e   : > { %1234 = vmatprep.subr.bf16.mxu0 %v1466_v17 }
  0x71   : > { %1235 = vmatpush3.bf16.msra.mxu0 %v1351_v24 }
  0x72   : > { %1236 = vmatprep.subr.bf16.mxu0 %v1466_v17 }
  0x75   : > { %1237 = vmatpush3.bf16.msra.mxu0 %v1352_v25 }
  0x78   : > { %1239 = vmatmul.mubr.bf16.vlgmr.msra.gmra.mxu0 %v1353_v26 }
 0x138   : > { %v618_v27 = vpop.f32.mrf.mxu0 }
 0x139   : > { %v625_v30 = vmax.f32 %v618_v27, 0.0 }
 0x13a   : > { %v1240_v28 = vpop.f32.mrf.mxu0 }
 0x13c   : > { %v621_v29 = vpop.f32.mrf.mxu0 }
 0x13d   : > { %v626_v31 = vmax.f32 %v621_v29, 0.0 }
 0x13e   : > { %v1241_v32 = vpop.f32.mrf.mxu0 }
 0x13f   : > { %v1197_v33 = vpack.c.bf16 %v626_v31, %v625_v30 }
 0x141   : > { %1198 = vst [vmem:[#allocation2] sm:$0xff] %v1197_v33  }
 0x142 PF: > { %v1356_v34 = vld [vmem:[%s1661_s16 + $0x38] sm:$0xff]   ;;  %v1469_v35 = vmov 0.0   ;;  %v1357_v36 = vld [vmem:[%s1661_s16 + $0x30] sm:$0xff]   ;;  %vm1470_vm2 = vmmov 0   ;;  %v1358_v37 = vld [vmem:[%s1661_s16 + $0x28] sm:$0xff]   ;;  %v1471_v44 = vmov 0   ;;  %v764_v57 = vlaneseq }
 0x143   : > { %1242 = vmatprep.subr.bf16.mxu0 %v1469_v35  ;;  %1258 = vmatprep.mubr.msk.bf16.mxu0 %vm1470_vm2, %v1469_v35  ;;  %v1359_v38 = vld [vmem:[%s1661_s16 + $0x20] sm:$0xff]   ;;  %v1360_v39 = vld [vmem:[%s1661_s16 + $0x18] sm:$0xff]   ;;  %v1361_v40 = vld [vmem:[%s1661_s16 + $0x10] sm:$0xff]   ;;  %vm819_vm3 = vcmask 7168   ;;  %s1176_s0 = sshll.u32 %s1447_s13, 7  ;;  %p1179_p10 = scmp.ne.s32.totalorder %s1447_s13, 1 }
 0x144   : > { %1243 = vmatpush3.bf16.msra.mxu0 %v1356_v34  ;;  %v1362_v41 = vld [vmem:[%s1661_s16 + $0x8] sm:$0xff]   ;;  %v1363_v42 = vld [vmem:[%s1661_s16] sm:$0xff]   ;;  %1355 = vset.pattern.permute.xlu0 %v1471_v44  ;;  %v779_v54 = vld [vmem:[#allocation3] sm:$0xff]  ;;  %v765_v62 = vand.u32 127, %v764_v57  ;;  %v767_v63 = vstv %s1176_s0 }
 0x145   : > { %1244 = vmatprep.subr.bf16.mxu0 %v1469_v35  ;;  %1354 = vset.pattern.permute.xlu1 %v1471_v44  ;;  %v1166_v45 = vld [vmem:[%s495_s15] ss:$0 sm:$0xff]  ;;  %v780_v58 = vld [vmem:[#allocation3 + $0x8] sm:$0xff]  ;;  %v1697_v1 = vld [vmem:[%s1634_s19 + $0x8] sm:$0xff] }
 0x146   : > { %v1690_v53 = vld [vmem:[%s1634_s19] sm:$0xff]  ;;  %v768_v2 = vadd.s32 %v767_v63, %v765_v62  ;;  %v826_v14 = vld [vmem:[#allocation5] sm:$0xff]  ;;  %v787_v21 = vld [vmem:[#allocation4] sm:$0xff] }
 0x147   : > { %v788_v25 = vld [vmem:[#allocation4 + $0x8] sm:$0xff]  ;;  %v827_v30 = vld [vmem:[#allocation5 + $0x8] sm:$0xff] }
 0x148   : > { %1245 = vmatpush3.bf16.msra.mxu0 %v1357_v36  ;;  %v1364_v43 = vld [vmem:[#allocation2] sm:$0xff]  }
 0x149   : > { %1246 = vmatprep.subr.bf16.mxu0 %v1469_v35 }
 0x14c   : > { %1247 = vmatpush3.bf16.msra.mxu0 %v1358_v37 }
 0x14d   : > { %1248 = vmatprep.subr.bf16.mxu0 %v1469_v35 }
 0x150   : > { %1249 = vmatpush3.bf16.msra.mxu0 %v1359_v38 }
 0x151   : > { %1250 = vmatprep.subr.bf16.mxu0 %v1469_v35 }
 0x154   : > { %1251 = vmatpush3.bf16.msra.mxu0 %v1360_v39 }
 0x155   : > { %1252 = vmatprep.subr.bf16.mxu0 %v1469_v35 }
 0x158   : > { %1253 = vmatpush3.bf16.msra.mxu0 %v1361_v40 }
 0x159   : > { %1254 = vmatprep.subr.bf16.mxu0 %v1469_v35 }
 0x15c   : > { %1255 = vmatpush3.bf16.msra.mxu0 %v1362_v41 }
 0x15d   : > { %1256 = vmatprep.subr.bf16.mxu0 %v1469_v35 }
 0x160   : > { %1257 = vmatpush3.bf16.msra.mxu0 %v1363_v42 }
 0x163   : > { %1259 = vmatmul.mubr.bf16.vlgmr.msra.gmra.mxu0 %v1364_v43 }
 0x223   : > { %v757_v46 = vpop.f32.mrf.mxu0 }
 0x224   : > { %v758_v47 = vadd.f32 %v1166_v45, %v757_v46 }
 0x225   : > { %v1260_v48 = vpop.f32.mrf.mxu0 }
 0x226   : > { %781 = vmax.xlane.f32.xlu0 %v758_v47 }
 0x227   : > { %v760_v49 = vpop.f32.mrf.mxu0 }
 0x228   : > { %v761_v50 = vadd.f32 %v1166_v45, %v760_v49 }
 0x229   : > { %v1261_v51 = vpop.f32.mrf.mxu0 }
 0x22a   : > { %v1202_v52 = vpack.c.bf16 %v761_v50, %v758_v47  ;;  %783 = vmax.xlane.f32.xlu0 %v761_v50 }
 0x22c   : > { %1203 = vst [vmem:[%s1663_s23] sm:$0xff] %v1202_v52  }
 0x240   : > { %829 = vperm.xlu0 %1355, %v1690_v53  }
 0x2af   : > { %v782_v55 = vpop.xlane.xlu0 %781 }
 0x2b0   : > { %v785_v56 = vmax.f32 %v779_v54, %v782_v55 }
 0x2b2   : > { %v789_v59 = vsub.f32 %v779_v54, %v785_v56  ;;  %822 = vst.msk [vmem:[#allocation3] sm:$0xff] %vm819_vm3, %v785_v56  ;;  %799 = vperm.xlu1 %1354, %v785_v56  }
 0x2b3   : > { %v784_v60 = vpop.xlane.xlu0 %783 }
 0x2b4   : > { %v786_v61 = vmax.f32 %v780_v58, %v784_v60  ;;  %v791_v18 = vmul.f32 1.442695, %v789_v59 }
 0x2b6   : > { %v790_v0 = vsub.f32 %v780_v58, %v786_v61  ;;  %823 = vst.msk [vmem:[#allocation3 + $0x8] sm:$0xff] %vm819_vm3, %v786_v61  ;;  %804 = vperm.xlu1 %1354, %v786_v61  }
 0x2b8   : > { %v793_v19 = vmul.f32 1.442695, %v790_v0 }
 0x2ba   : > { %832 = vperm.xlu1 %1354, %v1697_v1  }
 0x2bb   : > { %v830_v3 = vpop.permute.xlu0 %829 }
 0x2bc   : > { %vm834_vm4 = vcmp.eq.s32.totalorder %v768_v2, %v830_v3 }
 0x2bd   : > { %v836_v4 = vsel %vm834_vm4, %v758_v47, 0.0 }
 0x2be   : > { %838 = vadd.xlane.f32.xlu0 %v836_v4 }
 0x32d   : > { %v800_v5 = vpop.permute.xlu1 %799 }
 0x32e   : > { %v807_v6 = vsub.f32 %v758_v47, %v800_v5 }
 0x330   : > { %v809_v7 = vmul.f32 1.442695, %v807_v6 }
 0x331   : > { %v805_v8 = vpop.permute.xlu1 %804 }
 0x332   : > { %1365 = vpow2.f32 %v809_v7  ;;  %v808_v9 = vsub.f32 %v761_v50, %v805_v8 }
 0x334   : > { %v811_v10 = vmul.f32 1.442695, %v808_v9 }
 0x335   : > { %v833_v12 = vpop.permute.xlu1 %832 }
 0x336   : > { %1367 = vpow2.f32 %v811_v10  ;;  %vm835_vm5 = vcmp.eq.s32.totalorder %v768_v2, %v833_v12 }
 0x337   : > { %v837_v16 = vsel %vm835_vm5, %v761_v50, 0.0  ;;  %1369 = vpow2.f32 %v791_v18 }
 0x338   : > { %1371 = vpow2.f32 %v793_v19 }
 0x33f   : > { %v1366_v11 = vpop.eup %1365 }
 0x340   : > { %813 = vadd.xlane.f32.xlu1 %v1366_v11 }
 0x343   : > { %v1368_v13 = vpop.eup %1367 }
 0x344   : > { %815 = vadd.xlane.f32.xlu1 %v1368_v13  ;;  %v1370_v20 = vpop.eup %1369 }
 0x345   : > { %v795_v22 = vmul.f32 %v1370_v20, %v787_v21  ;;  %v1372_v23 = vpop.eup %1371 }
 0x346   : > { %v796_v27 = vmul.f32 %v1372_v23, %v788_v25 }
 0x347   : > { %v839_v15 = vpop.xlane.xlu0 %838 }
 0x348   : > { %v842_v17 = vadd.f32 %v839_v15, %v826_v14  ;;  %840 = vadd.xlane.f32.xlu1 %v837_v16 }
 0x34a   : > { %844 = vst.msk [vmem:[#allocation5] sm:$0xff] %vm819_vm3, %v842_v17 }
 0x3c9   : > { %v814_v24 = vpop.xlane.xlu1 %813 }
 0x3ca   : > { %v817_v26 = vadd.f32 %v814_v24, %v795_v22 }
 0x3cc   : > { %820 = vst.msk [vmem:[#allocation4] sm:$0xff] %vm819_vm3, %v817_v26 }
 0x3cd   : > { %v816_v28 = vpop.xlane.xlu1 %815 }
 0x3ce   : > { %v818_v29 = vadd.f32 %v816_v28, %v796_v27 }
 0x3d0   : > { %821 = vst.msk [vmem:[#allocation4 + $0x8] sm:$0xff] %vm819_vm3, %v818_v29  ;;  %849 = sbr.rel (%p1179_p10) target bundleno = 1213 (0x4bd), region = 89 }
 0x3d1   : > { %v841_v31 = vpop.xlane.xlu1 %840 }
 0x3d2   : > { %v843_v32 = vadd.f32 %v841_v31, %v827_v30 }
 0x3d4   : > { %845 = vst.msk [vmem:[#allocation5 + $0x8] sm:$0xff] %vm819_vm3, %v843_v32 }
 0x3d5   : > { %v852_v33 = vld [vmem:[#allocation4] sm:$0xff]  ;;  %v1472_v35 = vmov 0   ;;  %v850_v37 = vld [vmem:[#allocation3] sm:$0xff]  ;;  %v851_v39 = vld [vmem:[#allocation3 + $0x8] sm:$0xff]  ;;  %vm872_vm6 = vcmp.ge.s32.totalorder %v1690_v53, 0  ;;  %vm873_vm7 = vcmp.ge.s32.totalorder %v1697_v1, 0 }
 0x3d6   : > { %1375 = vlog2.f32 %v852_v33  ;;  %1373 = vset.pattern.permute.xlu0 %v1472_v35  ;;  %1374 = vset.pattern.permute.xlu1 %v1472_v35  ;;  %v878_v42 = vld [vmem:[#allocation5] sm:$0xff]  ;;  %v1473_v46 = vmov 0.0  }
 0x3d7   : > { %v853_v34 = vld [vmem:[#allocation4 + $0x8] sm:$0xff]  ;;  %v1180_v47 = vsel %vm872_vm6, 1.0, %v1473_v46  ;;  %v1181_v48 = vsel %vm873_vm7, 1.0, %v1473_v46 }
 0x3d8   : > { %1377 = vlog2.f32 %v853_v34 }
 0x3db   : > { %v879_v44 = vld [vmem:[#allocation5 + $0x8] sm:$0xff] }
 0x3e3   : > { %v1376_v36 = vpop.eup %1375 }
 0x3e4   : > { %v855_v40 = vmul.f32 0.6931472, %v1376_v36 }
 0x3e5   : > { %v1378_v38 = vpop.eup %1377 }
 0x3e6   : > { %v857_v41 = vmul.f32 0.6931472, %v1378_v38  ;;  %v858_v43 = vadd.f32 %v855_v40, %v850_v37 }
 0x3e8   : > { %v859_v45 = vadd.f32 %v857_v41, %v851_v39  ;;  %v880_v49 = vsub.f32 %v858_v43, %v878_v42 }
 0x3ea   : > { %v881_v50 = vsub.f32 %v859_v45, %v879_v44  ;;  %867 = vperm.xlu1 %1374, %v859_v45   ;;  %v882_v51 = vmul.f32 %v1180_v47, %v880_v49 }
 0x3ec   : > { %v883_v52 = vmul.f32 %v1181_v48, %v881_v50  ;;  %v884_v54 = vsel %vm819_vm3, %v882_v51, 0.0 }
 0x3ee   : > { %v885_v53 = vsel %vm819_vm3, %v883_v52, 0.0 }
 0x3ef   : > { %v886_v55 = vadd.f32 %v885_v53, %v884_v54 }
 0x3f1   : > { %887 = vadd.xlane.f32.xlu0 %v886_v55 }
 0x407   : > { %862 = vperm.xlu0 %1373, %v858_v43  }
 0x465   : > { %v868_v61 = vpop.permute.xlu1 %867 }
 0x466   : > { %871 = vst [vmem:[%s1648_s28 + $0x8] sm:$0xff] %v868_v61 }
 0x47a   : > { %v888_v56 = vpop.xlane.xlu0 %887 }
 0x47b   : > { %v889_v57 = vrot.slane %v888_v56, 4 }
 0x47d   : > { %v890_v58 = vadd.f32 %v889_v57, %v888_v56 }
 0x47f   : > { %v891_v59 = vrot.slane %v890_v58, 2 }
 0x481   : > { %v892_v60 = vadd.f32 %v891_v59, %v890_v58 }
 0x482   : > { %v863_v62 = vpop.permute.xlu0 %862 }
 0x483   : > { %v893_v63 = vrot.slane %v892_v60, 1  ;;  %870 = vst [vmem:[%s1648_s28] sm:$0xff] %v863_v62 }
 0x485   : > { %v894_v0 = vadd.f32 %v893_v63, %v892_v60 }
 0x487   : > { %1262 = vpush %v894_v0 }
 0x4b8   : > { %s1263_s15 = spop %1262 }
 0x4b9   : > { %s896_s19 = smul.f32 0.016129032, %s1263_s15 }
 0x4bb   : > { %v897_v1 = vstv %s896_s19 }
 0x4bc   : > { %898 = vst [vmem:[%s1659_s2] sm:$0xff] %v897_v1 }
 0x4bd PF: > { %914 = sbr.rel (!%p1589_p0) target bundleno = 1218 (0x4c2), region = 93  ;;  %s1193_s24 = sshll.u32 (%p1589_p0), %s1451_s14, 2  ;;  %v936_v2 = vld [vmem:[%s1663_s23] sm:$0xf] (%p1589_p0)  ;;  %v938_v3 = vld [vmem:[%s1663_s23 + $0x4] sm:$0xf] (%p1589_p0) }
 0x4be   : > { %s917_s25 = sadd.s32 (%p1589_p0), %s1447_s13, %s1193_s24 }
 0x4bf   : > { %s1185_s26 = sshll.u32 (%p1589_p0), %s917_s25, 2 }
 0x4c0   : > { %s919_s9 = scalar_lea.vmem (%p1589_p0), %s1754_s6, %s1185_s26 }
 0x4c1   : > { %937 = vst [vmem:[%s919_s9] sm:$0xf] (%p1589_p0), %v936_v2  ;;  %939 = vst [vmem:[%s919_s9 + $0x8] sm:$0xf] (%p1589_p0), %v938_v3 }
 0x4c2 PF: > { %s25_s17 = sadd.s32 1, %s1463_s17   ;;  %s1778_s10 = sld [smem:[#allocation11_spill]] }
 0x4c3   : > { %p22_p11 = scmp.ge.s32.totalorder %s25_s17, 10   ;;  %s1779_s11 = sld [smem:[#allocation18_spill]] }
 0x4c4   : > { %s1780_s12 = sld [smem:[#allocation12_spill]] }
 0x4c5   : > { %s1781_s0 = sld [smem:[#allocation17_spill]]  ;;  %24 = sbr.rel (!%p22_p11) target bundleno = 21 (0x15), region = 201 }
 0x4c6   : > { %s1782_s13 = sld [smem:[#allocation13_spill]] }
 0x4c7   : > { %s1783_s14 = sld [smem:[#allocation14_spill]] }
 0x4c8   : > { %s1784_s15 = sld [smem:[#allocation15_spill]] }
 0x4c9   : > { %s1785_s16 = sld [smem:[#allocation16_spill]] }

</bundles_post_ra>
